<compile_context>
chip_gen: v6e
topology: v6e:2x2x1
jax: 0.10.0
libtpu: 0.0.40
codegen_flags: <defaults>
</compile_context>

<pallas_src>
import jax
import jax.numpy as jnp
from jax.experimental import pallas as pl
from jax.experimental.pallas import tpu as pltpu


def _mlp_kernel(x_ref, w1_ref, b1_ref, w2_ref, b2_ref, wo_ref, bo_ref, out_ref):
    # hidden layer 1: Linear + (Dropout = identity in eval) + ReLU
    h = jnp.dot(x_ref[...], w1_ref[...], preferred_element_type=jnp.float32)
    h = jnp.maximum(h + b1_ref[...], 0.0).astype(jnp.bfloat16)
    # hidden layer 2: Linear + (Dropout = identity in eval) + ReLU
    h = jnp.dot(h, w2_ref[...], preferred_element_type=jnp.float32)
    h = jnp.maximum(h + b2_ref[...], 0.0).astype(jnp.bfloat16)
    # output layer: Linear + sigmoid (lane-dense padded output; the real column(s)
    # are sliced out in the wrapper)
    logits = jnp.dot(h, wo_ref[...], preferred_element_type=jnp.float32) + bo_ref[...]
    out_ref[...] = jax.nn.sigmoid(logits)


def _round_up(n, m):
    return ((n + m - 1) // m) * m


def _pad2(a, rows, cols):
    return jnp.pad(a, ((0, rows - a.shape[0]), (0, cols - a.shape[1])))


@jax.jit
def mlp_forward(x, params):
    """params: dict with w1,b1,w2,b2,wo,bo (weights stored [in, out], f32)."""
    B, D_in = x.shape
    H0 = params["w1"].shape[1]
    H1 = params["w2"].shape[1]
    D_out = params["wo"].shape[1]

    LANE = 128
    D_in_p = _round_up(D_in, LANE)
    H0_p = _round_up(H0, LANE)
    H1_p = _round_up(H1, LANE)
    Do_p = _round_up(D_out, LANE)

    # Batch tile: up to 512 rows per grid step (good HBM/MXU overlap); a single tile
    # when the batch is small (rounded to 16 rows for bf16 sublane packing).
    TB = min(512, _round_up(B, 16))
    B_pad = _round_up(B, TB)

    # Zero-pad once in the wrapper; zero-padded weight rows/cols and zero biases leave
    # the real outputs unchanged. Matmul operands in bf16, biases in f32.
    x_p = _pad2(x, B_pad, D_in_p).astype(jnp.bfloat16)
    w1 = _pad2(params["w1"], D_in_p, H0_p).astype(jnp.bfloat16)
    b1 = _pad2(params["b1"], 1, H0_p).astype(jnp.float32)
    w2 = _pad2(params["w2"], H0_p, H1_p).astype(jnp.bfloat16)
    b2 = _pad2(params["b2"], 1, H1_p).astype(jnp.float32)
    wo = _pad2(params["wo"], H1_p, Do_p).astype(jnp.bfloat16)
    bo = _pad2(params["bo"], 1, Do_p).astype(jnp.float32)

    grid = (B_pad // TB,)

    flops = 2 * B_pad * (D_in_p * H0_p + H0_p * H1_p + H1_p * Do_p)
    bytes_accessed = (
        x_p.size * 2 + w1.size * 2 + w2.size * 2 + wo.size * 2
        + (b1.size + b2.size + bo.size) * 4 + B_pad * Do_p * 4
    )

    out = pl.pallas_call(
        _mlp_kernel,
        out_shape=jax.ShapeDtypeStruct((B_pad, Do_p), jnp.float32),
        grid=grid,
        in_specs=[
            pl.BlockSpec((TB, D_in_p), lambda i: (i, 0)),     # x tile (pipelined)
            pl.BlockSpec((D_in_p, H0_p), lambda i: (0, 0)),   # w1 (VMEM-resident)
            pl.BlockSpec((1, H0_p), lambda i: (0, 0)),        # b1
            pl.BlockSpec((H0_p, H1_p), lambda i: (0, 0)),     # w2
            pl.BlockSpec((1, H1_p), lambda i: (0, 0)),        # b2
            pl.BlockSpec((H1_p, Do_p), lambda i: (0, 0)),     # wo
            pl.BlockSpec((1, Do_p), lambda i: (0, 0)),        # bo
        ],
        out_specs=pl.BlockSpec((TB, Do_p), lambda i: (i, 0)),
        compiler_params=pltpu.CompilerParams(
            dimension_semantics=("parallel",),       # batch tiles shard across TCs on v7x
            vmem_limit_bytes=32 * 1024 * 1024,       # explicit; safe on v7x's 64 MiB VMEM
        ),
        cost_estimate=pl.CostEstimate(
            flops=flops,
            transcendentals=B_pad * Do_p,
            bytes_accessed=bytes_accessed,
        ),
    )(x_p, w1, b1, w2, b2, wo, bo)

    # Slice the real rows/columns and apply PyTorch .squeeze() semantics
    # (D_out == 1 -> shape (B,); also drops B if B == 1, same as torch).
    return jnp.squeeze(out[:B, :D_out])


def mlp_reference(x, params):
    """Pure-JAX f32 reference of the module's forward (eval mode)."""
    h = jnp.maximum(x @ params["w1"] + params["b1"], 0.0)
    h = jnp.maximum(h @ params["w2"] + params["b2"], 0.0)
    return jnp.squeeze(jax.nn.sigmoid(h @ params["wo"] + params["bo"]))


def init_params(key, D_in, H, D_out):
    """Deterministic parameter init (PyTorch-like uniform fan-in scaling),
    weights stored transposed as [in, out]."""
    ks = jax.random.split(key, 6)

    def lin(kw, kb, fan_in, fan_out):
        bound = 1.0 / jnp.sqrt(fan_in)
        w = jax.random.uniform(kw, (fan_in, fan_out), jnp.float32, -bound, bound)
        b = jax.random.uniform(kb, (1, fan_out), jnp.float32, -bound, bound)
        return w, b

    w1, b1 = lin(ks[0], ks[1], D_in, H[0])
    w2, b2 = lin(ks[2], ks[3], H[0], H[1])
    wo, bo = lin(ks[4], ks[5], H[1], D_out)
    return {"w1": w1, "b1": b1, "w2": w2, "b2": b2, "wo": wo, "bo": bo}


if __name__ == "__main__":
    key = jax.random.PRNGKey(0)
    k_x, k_p = jax.random.split(key)

    B, D_in, H, D_out = 8, 16, [32, 32], 1
    x = jax.random.normal(k_x, (B, D_in), dtype=jnp.float32)
    params = init_params(k_p, D_in, H, D_out)

    y = mlp_forward(x, params)
    jax.block_until_ready(y)

    y_ref = mlp_reference(x, params)

    assert y.shape == (B,), y.shape
    assert bool(jnp.all((y >= 0.0) & (y <= 1.0)))
    assert bool(jnp.allclose(y, y_ref, atol=3e-2)), (y, y_ref)
    print("KERNEL_OK")
</pallas_src>

<mosaic_0001>
module attributes {stable_mosaic.version = 11 : i64} {
  func.func @_mlp_kernel(%arg0: i32, %arg1: memref<16x128xbf16, #tpu.memory_space<vmem>>, %arg2: memref<128x128xbf16, #tpu.memory_space<vmem>>, %arg3: memref<1x128xf32, #tpu.memory_space<vmem>>, %arg4: memref<128x128xbf16, #tpu.memory_space<vmem>>, %arg5: memref<1x128xf32, #tpu.memory_space<vmem>>, %arg6: memref<128x128xbf16, #tpu.memory_space<vmem>>, %arg7: memref<1x128xf32, #tpu.memory_space<vmem>>, %arg8: memref<16x128xf32, #tpu.memory_space<vmem>>) attributes {dimension_semantics = [#tpu.dimension_semantics<parallel>], iteration_bounds = array<i64: 1>, scalar_prefetch = 0 : i64, scratch_operands = 0 : i64, tpu.core_type = #tpu.core_type<tc>, window_params = [{transform_indices = @transform_0, window_bounds = array<i64: 16, 128>}, {pipeline_mode = #tpu.pipeline_mode<synchronous>, transform_indices = @transform_1, window_bounds = array<i64: 128, 128>}, {pipeline_mode = #tpu.pipeline_mode<synchronous>, transform_indices = @transform_2, window_bounds = array<i64: 1, 128>}, {pipeline_mode = #tpu.pipeline_mode<synchronous>, transform_indices = @transform_3, window_bounds = array<i64: 128, 128>}, {pipeline_mode = #tpu.pipeline_mode<synchronous>, transform_indices = @transform_4, window_bounds = array<i64: 1, 128>}, {pipeline_mode = #tpu.pipeline_mode<synchronous>, transform_indices = @transform_5, window_bounds = array<i64: 128, 128>}, {pipeline_mode = #tpu.pipeline_mode<synchronous>, transform_indices = @transform_6, window_bounds = array<i64: 1, 128>}, {transform_indices = @transform_7, window_bounds = array<i64: 16, 128>}]} {
    %c0 = arith.constant 0 : index
    %c0_0 = arith.constant 0 : index
    %0 = vector.load %arg1[%c0, %c0_0] : memref<16x128xbf16, #tpu.memory_space<vmem>>, vector<16x128xbf16>
    %c0_1 = arith.constant 0 : index
    %c0_2 = arith.constant 0 : index
    %1 = vector.load %arg2[%c0_1, %c0_2] : memref<128x128xbf16, #tpu.memory_space<vmem>>, vector<128x128xbf16>
    %cst = arith.constant dense<0.000000e+00> : vector<16x128xf32>
    %2 = tpu.matmul %0, %1, %cst {dimension_numbers = #tpu.dot_dimension_numbers<[1], [0], [0], [1], [0, 0, 1, 1], [], []>} : vector<16x128xbf16>, vector<128x128xbf16>, vector<16x128xf32> -> vector<16x128xf32>
    %c0_3 = arith.constant 0 : index
    %c0_4 = arith.constant 0 : index
    %3 = vector.load %arg3[%c0_3, %c0_4] : memref<1x128xf32, #tpu.memory_space<vmem>>, vector<1x128xf32>
    %4 = vector.broadcast %3 : vector<1x128xf32> to vector<16x128xf32>
    %5 = arith.addf %2, %4 : vector<16x128xf32>
    %cst_5 = arith.constant 0.000000e+00 : f32
    %6 = vector.broadcast %cst_5 : f32 to vector<16x128xf32>
    %7 = arith.maximumf %5, %6 : vector<16x128xf32>
    %8 = arith.truncf %7 : vector<16x128xf32> to vector<16x128xbf16>
    %c0_6 = arith.constant 0 : index
    %c0_7 = arith.constant 0 : index
    %9 = vector.load %arg4[%c0_6, %c0_7] : memref<128x128xbf16, #tpu.memory_space<vmem>>, vector<128x128xbf16>
    %cst_8 = arith.constant dense<0.000000e+00> : vector<16x128xf32>
    %10 = tpu.matmul %8, %9, %cst_8 {dimension_numbers = #tpu.dot_dimension_numbers<[1], [0], [0], [1], [0, 0, 1, 1], [], []>} : vector<16x128xbf16>, vector<128x128xbf16>, vector<16x128xf32> -> vector<16x128xf32>
    %c0_9 = arith.constant 0 : index
    %c0_10 = arith.constant 0 : index
    %11 = vector.load %arg5[%c0_9, %c0_10] : memref<1x128xf32, #tpu.memory_space<vmem>>, vector<1x128xf32>
    %12 = vector.broadcast %11 : vector<1x128xf32> to vector<16x128xf32>
    %13 = arith.addf %10, %12 : vector<16x128xf32>
    %cst_11 = arith.constant 0.000000e+00 : f32
    %14 = vector.broadcast %cst_11 : f32 to vector<16x128xf32>
    %15 = arith.maximumf %13, %14 : vector<16x128xf32>
    %16 = arith.truncf %15 : vector<16x128xf32> to vector<16x128xbf16>
    %c0_12 = arith.constant 0 : index
    %c0_13 = arith.constant 0 : index
    %17 = vector.load %arg6[%c0_12, %c0_13] : memref<128x128xbf16, #tpu.memory_space<vmem>>, vector<128x128xbf16>
    %cst_14 = arith.constant dense<0.000000e+00> : vector<16x128xf32>
    %18 = tpu.matmul %16, %17, %cst_14 {dimension_numbers = #tpu.dot_dimension_numbers<[1], [0], [0], [1], [0, 0, 1, 1], [], []>} : vector<16x128xbf16>, vector<128x128xbf16>, vector<16x128xf32> -> vector<16x128xf32>
    %c0_15 = arith.constant 0 : index
    %c0_16 = arith.constant 0 : index
    %19 = vector.load %arg7[%c0_15, %c0_16] : memref<1x128xf32, #tpu.memory_space<vmem>>, vector<1x128xf32>
    %20 = vector.broadcast %19 : vector<1x128xf32> to vector<16x128xf32>
    %21 = arith.addf %18, %20 : vector<16x128xf32>
    %22 = arith.negf %21 : vector<16x128xf32>
    %23 = math.exp %22 : vector<16x128xf32>
    %cst_17 = arith.constant 1.000000e+00 : f32
    %24 = vector.broadcast %cst_17 : f32 to vector<16x128xf32>
    %25 = arith.addf %24, %23 : vector<16x128xf32>
    %26 = arith.divf %24, %25 : vector<16x128xf32>
    %c0_18 = arith.constant 0 : index
    %c0_19 = arith.constant 0 : index
    %27 = vector.load %arg8[%c0_18, %c0_19] : memref<16x128xf32, #tpu.memory_space<vmem>>, vector<16x128xf32>
    tpu.vector_store %arg8[%c0_18, %c0_19], %26 {strides = array<i32>} : memref<16x128xf32, #tpu.memory_space<vmem>>, vector<16x128xf32>,
    return
  }
  func.func @transform_0(%arg0: i32) -> (i32, i32) {
    %c0_i32 = arith.constant 0 : i32
    %c0_i32_0 = arith.constant 0 : i32
    return %arg0, %c0_i32 : i32, i32
  }
  func.func @transform_1(%arg0: i32) -> (i32, i32) {
    %c0_i32 = arith.constant 0 : i32
    %c0_i32_0 = arith.constant 0 : i32
    %c0_i32_1 = arith.constant 0 : i32
    return %c0_i32, %c0_i32_0 : i32, i32
  }
  func.func @transform_2(%arg0: i32) -> (i32, i32) {
    %c0_i32 = arith.constant 0 : i32
    %c0_i32_0 = arith.constant 0 : i32
    %c0_i32_1 = arith.constant 0 : i32
    return %c0_i32, %c0_i32_0 : i32, i32
  }
  func.func @transform_3(%arg0: i32) -> (i32, i32) {
    %c0_i32 = arith.constant 0 : i32
    %c0_i32_0 = arith.constant 0 : i32
    %c0_i32_1 = arith.constant 0 : i32
    return %c0_i32, %c0_i32_0 : i32, i32
  }
  func.func @transform_4(%arg0: i32) -> (i32, i32) {
    %c0_i32 = arith.constant 0 : i32
    %c0_i32_0 = arith.constant 0 : i32
    %c0_i32_1 = arith.constant 0 : i32
    return %c0_i32, %c0_i32_0 : i32, i32
  }
  func.func @transform_5(%arg0: i32) -> (i32, i32) {
    %c0_i32 = arith.constant 0 : i32
    %c0_i32_0 = arith.constant 0 : i32
    %c0_i32_1 = arith.constant 0 : i32
    return %c0_i32, %c0_i32_0 : i32, i32
  }
  func.func @transform_6(%arg0: i32) -> (i32, i32) {
    %c0_i32 = arith.constant 0 : i32
    %c0_i32_0 = arith.constant 0 : i32
    %c0_i32_1 = arith.constant 0 : i32
    return %c0_i32, %c0_i32_0 : i32, i32
  }
  func.func @transform_7(%arg0: i32) -> (i32, i32) {
    %c0_i32 = arith.constant 0 : i32
    %c0_i32_0 = arith.constant 0 : i32
    return %arg0, %c0_i32 : i32, i32
  }
}

</mosaic_0001>

<bundles_post_ra>
// kernel: mlp_forward.1
= control target key start
LH: loop header
LB: loop body
LE: loop exit
PB: predicated region body
PF: predicated region fallthrough
CT: control target
= control target key end

     0   :  { %v547_v0 = vmov 0.0   ;;  %vm548_vm0 = vmmov 0   ;;  %s709_s1 = inlined_call_operand.vmem [shape: bf16[128,128], index: 1, kind: input, shape index: {}]   ;;  %s710_s3 = inlined_call_operand.vmem [shape: bf16[128,128], index: 3, kind: input, shape index: {}]   ;;  %s711_s0 = inlined_call_operand.vmem [shape: bf16[16,128], index: 0, kind: input, shape index: {}]   ;;  %s712_s5 = inlined_call_operand.vmem [shape: bf16[128,128], index: 5, kind: input, shape index: {}]   ;;  %s713_s2 = inlined_call_operand.vmem [shape: f32[1,128], index: 2, kind: input, shape index: {}]   ;;  %s714_s4 = inlined_call_operand.vmem [shape: f32[1,128], index: 4, kind: input, shape index: {}]   ;;  %s715_s6 = inlined_call_operand.vmem [shape: f32[1,128], index: 6, kind: input, shape index: {}]   ;;  %s716_s7 = inlined_call_operand.vmem [shape: f32[16,128], index: 7, kind: output, shape index: {}]  }
   0x1   :  { %452 = vmatprep.subr.bf16.mxu0 %v547_v0  ;;  %v514_v1 = vld [vmem:[%s709_s1 + $0x38] sm:$0xff]   ;;  %468 = vmatprep.mubr.msk.bf16.mxu0 %vm548_vm0, %v547_v0  ;;  %v515_v2 = vld [vmem:[%s709_s1 + $0x30] sm:$0xff]   ;;  %v516_v3 = vld [vmem:[%s709_s1 + $0x28] sm:$0xff]  }
   0x2   :  { %472 = vmatprep.subr.bf16.mxu1 %v547_v0  ;;  %488 = vmatprep.mubr.msk.bf16.mxu1 %vm548_vm0, %v547_v0  ;;  %v523_v4 = vld [vmem:[%s710_s3 + $0x38] sm:$0xff]   ;;  %v517_v5 = vld [vmem:[%s709_s1 + $0x20] sm:$0xff]   ;;  %v524_v6 = vld [vmem:[%s710_s3 + $0x30] sm:$0xff]  }
   0x3   :  { %453 = vmatpush3.bf16.msra.mxu0 %v514_v1  ;;  %473 = vmatpush3.bf16.msra.mxu1 %v523_v4  ;;  %v518_v7 = vld [vmem:[%s709_s1 + $0x18] sm:$0xff]   ;;  %v525_v8 = vld [vmem:[%s710_s3 + $0x28] sm:$0xff]   ;;  %v519_v9 = vld [vmem:[%s709_s1 + $0x10] sm:$0xff]  }
   0x4   :  { %454 = vmatprep.subr.bf16.mxu0 %v547_v0  ;;  %474 = vmatprep.subr.bf16.mxu1 %v547_v0  ;;  %v526_v10 = vld [vmem:[%s710_s3 + $0x20] sm:$0xff]   ;;  %v520_v11 = vld [vmem:[%s709_s1 + $0x8] sm:$0xff]   ;;  %v527_v12 = vld [vmem:[%s710_s3 + $0x18] sm:$0xff]  }
   0x5   :  { %v521_v13 = vld [vmem:[%s709_s1] sm:$0xff]   ;;  %v528_v15 = vld [vmem:[%s710_s3 + $0x10] sm:$0xff]   ;;  %v529_v16 = vld [vmem:[%s710_s3 + $0x8] sm:$0xff]  }
   0x6   :  { %v522_v14 = vld [vmem:[%s711_s0] sm:$0xff]   ;;  %v531_v18 = vld [vmem:[%s712_s5 + $0x38] sm:$0xff]   ;;  %v532_v19 = vld [vmem:[%s712_s5 + $0x30] sm:$0xff]  }
   0x7   :  { %455 = vmatpush3.bf16.msra.mxu0 %v515_v2  ;;  %475 = vmatpush3.bf16.msra.mxu1 %v524_v6  ;;  %v530_v17 = vld [vmem:[%s710_s3] sm:$0xff]   ;;  %v533_v20 = vld [vmem:[%s712_s5 + $0x28] sm:$0xff]   ;;  %v535_v22 = vld [vmem:[%s712_s5 + $0x18] sm:$0xff]  }
   0x8   :  { %456 = vmatprep.subr.bf16.mxu0 %v547_v0  ;;  %476 = vmatprep.subr.bf16.mxu1 %v547_v0  ;;  %v534_v21 = vld [vmem:[%s712_s5 + $0x20] sm:$0xff]   ;;  %v536_v33 = vld [vmem:[%s712_s5 + $0x10] sm:$0xff]   ;;  %v537_v34 = vld [vmem:[%s712_s5 + $0x8] sm:$0xff]  }
   0x9   :  { %v395_v23 = vld [vmem:[%s713_s2] ss:$0 sm:$0xff] }
   0xa   :  { %v538_v35 = vld [vmem:[%s712_s5] sm:$0xff]  }
   0xb   :  { %457 = vmatpush3.bf16.msra.mxu0 %v516_v3  ;;  %477 = vmatpush3.bf16.msra.mxu1 %v525_v8  ;;  %v405_v36 = vld [vmem:[%s714_s4] ss:$0 sm:$0xff] }
   0xc   :  { %458 = vmatprep.subr.bf16.mxu0 %v547_v0  ;;  %478 = vmatprep.subr.bf16.mxu1 %v547_v0  ;;  %v414_v46 = vld [vmem:[%s715_s6] ss:$0 sm:$0xff] }
   0xf   :  { %459 = vmatpush3.bf16.msra.mxu0 %v517_v5  ;;  %479 = vmatpush3.bf16.msra.mxu1 %v526_v10 }
  0x10   :  { %460 = vmatprep.subr.bf16.mxu0 %v547_v0  ;;  %480 = vmatprep.subr.bf16.mxu1 %v547_v0 }
  0x13   :  { %461 = vmatpush3.bf16.msra.mxu0 %v518_v7  ;;  %481 = vmatpush3.bf16.msra.mxu1 %v527_v12 }
  0x14   :  { %462 = vmatprep.subr.bf16.mxu0 %v547_v0  ;;  %482 = vmatprep.subr.bf16.mxu1 %v547_v0 }
  0x17   :  { %463 = vmatpush3.bf16.msra.mxu0 %v519_v9  ;;  %483 = vmatpush3.bf16.msra.mxu1 %v528_v15 }
  0x18   :  { %464 = vmatprep.subr.bf16.mxu0 %v547_v0  ;;  %484 = vmatprep.subr.bf16.mxu1 %v547_v0 }
  0x1b   :  { %465 = vmatpush3.bf16.msra.mxu0 %v520_v11  ;;  %485 = vmatpush3.bf16.msra.mxu1 %v529_v16 }
  0x1c   :  { %466 = vmatprep.subr.bf16.mxu0 %v547_v0  ;;  %486 = vmatprep.subr.bf16.mxu1 %v547_v0 }
  0x1f   :  { %467 = vmatpush3.bf16.msra.mxu0 %v521_v13  ;;  %487 = vmatpush3.bf16.msra.mxu1 %v530_v17 }
  0x20   :  { %492 = vmatprep.subr.bf16.mxu0 %v547_v0 }
  0x22   :  { %469 = vmatmul.mubr.bf16.vlgmr.msra.gmra.mxu0 %v522_v14 }
  0x23   :  { %508 = vmatprep.mubr.msk.bf16.mxu0 %vm548_vm0, %v547_v0  ;;  %493 = vmatpush3.bf16.msra.mxu0 %v531_v18 }
  0x24   :  { %494 = vmatprep.subr.bf16.mxu0 %v547_v0 }
  0x27   :  { %495 = vmatpush3.bf16.msra.mxu0 %v532_v19 }
  0x28   :  { %496 = vmatprep.subr.bf16.mxu0 %v547_v0 }
  0x2b   :  { %497 = vmatpush3.bf16.msra.mxu0 %v533_v20 }
  0x2c   :  { %498 = vmatprep.subr.bf16.mxu0 %v547_v0 }
  0x2f   :  { %499 = vmatpush3.bf16.msra.mxu0 %v534_v21 }
  0x30   :  { %500 = vmatprep.subr.bf16.mxu0 %v547_v0 }
  0x33   :  { %501 = vmatpush3.bf16.msra.mxu0 %v535_v22 }
  0x34   :  { %502 = vmatprep.subr.bf16.mxu0 %v547_v0 }
  0x37   :  { %503 = vmatpush3.bf16.msra.mxu0 %v536_v33 }
  0x38   :  { %504 = vmatprep.subr.bf16.mxu0 %v547_v0 }
  0x3b   :  { %505 = vmatpush3.bf16.msra.mxu0 %v537_v34 }
  0x3c   :  { %506 = vmatprep.subr.bf16.mxu0 %v547_v0 }
  0x3f   :  { %507 = vmatpush3.bf16.msra.mxu0 %v538_v35 }
  0xe2   :  { %v140_v24 = vpop.f32.mrf.mxu0 }
  0xe3   :  { %v141_v26 = vadd.f32 %v395_v23, %v140_v24 }
  0xe4   :  { %v470_v25 = vpop.f32.mrf.mxu0 }
  0xe5   :  { %v147_v30 = vmax.f32 %v141_v26, 0.0 }
  0xe6   :  { %v143_v27 = vpop.f32.mrf.mxu0 }
  0xe7   :  { %v144_v28 = vadd.f32 %v395_v23, %v143_v27 }
  0xe8   :  { %v471_v29 = vpop.f32.mrf.mxu0 }
  0xe9   :  { %v148_v31 = vmax.f32 %v144_v28, 0.0 }
  0xeb   :  { %v149_v32 = vpack.c.bf16 %v148_v31, %v147_v30 }
  0xed   :  { %489 = vmatmul.mubr.bf16.vlgmr.msra.gmra.mxu1 %v149_v32 }
 0x1ad   :  { %v255_v37 = vpop.f32.mrf.mxu1 }
 0x1ae   :  { %v256_v39 = vadd.f32 %v405_v36, %v255_v37 }
 0x1af   :  { %v490_v38 = vpop.f32.mrf.mxu1 }
 0x1b0   :  { %v262_v43 = vmax.f32 %v256_v39, 0.0 }
 0x1b1   :  { %v258_v40 = vpop.f32.mrf.mxu1 }
 0x1b2   :  { %v259_v41 = vadd.f32 %v405_v36, %v258_v40 }
 0x1b3   :  { %v491_v42 = vpop.f32.mrf.mxu1 }
 0x1b4   :  { %v263_v44 = vmax.f32 %v259_v41, 0.0 }
 0x1b6   :  { %v264_v45 = vpack.c.bf16 %v263_v44, %v262_v43 }
 0x1b8   :  { %509 = vmatmul.mubr.bf16.vlgmr.msra.gmra.mxu0 %v264_v45 }
 0x278   :  { %v370_v47 = vpop.f32.mrf.mxu0 }
 0x279   :  { %v371_v48 = vadd.f32 %v414_v46, %v370_v47 }
 0x27a   :  { %v510_v49 = vpop.f32.mrf.mxu0 }
 0x27b   :  { %v423_v50 = vmul.f32 -1.442695, %v371_v48 }
 0x27c   :  { %v373_v51 = vpop.f32.mrf.mxu0 }
 0x27d   :  { %539 = vpow2.f32 %v423_v50  ;;  %v374_v52 = vadd.f32 %v414_v46, %v373_v51 }
 0x27e   :  { %v511_v53 = vpop.f32.mrf.mxu0 }
 0x27f   :  { %v424_v54 = vmul.f32 -1.442695, %v374_v52 }
 0x281   :  { %541 = vpow2.f32 %v424_v54 }
 0x28a   :  { %v540_v55 = vpop.eup %539 }
 0x28b   :  { %v383_v56 = vadd.f32 1.0, %v540_v55 }
 0x28d   :  { %543 = vrcp.f32 %v383_v56 }
 0x28e   :  { %v542_v57 = vpop.eup %541 }
 0x28f   :  { %v384_v58 = vadd.f32 1.0, %v542_v57 }
 0x291   :  { %545 = vrcp.f32 %v384_v58 }
 0x29a   :  { %v544_v59 = vpop.eup %543 }
 0x29b   :  { %389 = vst [vmem:[%s716_s7] sm:$0xff] %v544_v59 }
 0x29e   :  { %v546_v60 = vpop.eup %545 }
 0x29f   :  { %390 = vst [vmem:[%s716_s7 + $0x8] sm:$0xff] %v546_v60 }

</bundles_post_ra>
